<compile_context>
chip_gen: v7x
topology: tpu7x:2x2x1
jax: 0.10.0
libtpu: 0.0.40
codegen_flags: <defaults>
</compile_context>

<pallas_src>
import math

import jax
import jax.numpy as jnp
from jax.experimental import pallas as pl
from jax.experimental.pallas import tpu as pltpu

INPUT_DIM = 768
HIDDEN_DIM = 512
OUT_DIM = 2
OUT_PAD = 128          # lane-dense padded output width
LEAKY_SLOPE = 0.01     # torch.nn.LeakyReLU default negative_slope


def _agent_mlp_kernel(x_ref, w1_ref, b1_ref, w2_ref, b2_ref, o_ref):
    # Layer 1: (TB, 768) bf16 @ (768, 512) bf16 -> f32 accumulate on the MXU.
    h = jnp.dot(x_ref[...], w1_ref[...], preferred_element_type=jnp.float32)
    h = h + b1_ref[...]                       # bias add in f32
    # LeakyReLU (slope in (0,1)): one vmul + one vmax on the VPU.
    h = jnp.maximum(h, LEAKY_SLOPE * h)
    # Layer 2: (TB, 512) bf16 @ (512, 128) bf16 -> f32; lane-dense output.
    out = jnp.dot(h.astype(jnp.bfloat16), w2_ref[...],
                  preferred_element_type=jnp.float32)
    out = out + b2_ref[...]
    o_ref[...] = out.astype(o_ref.dtype)


def agent_forward(x, w1, b1, w2, b2):
    """Fused 2-layer MLP forward pass.

    x:  (B, INPUT_DIM) float32
    w1: (INPUT_DIM, HIDDEN_DIM), b1: (1, HIDDEN_DIM)
    w2: (HIDDEN_DIM, OUT_DIM),   b2: (1, OUT_DIM)
    returns (B, OUT_DIM) float32
    """
    B = x.shape[0]

    # bf16 matmul operands (f32 accumulation inside the kernel).
    x_bf = x.astype(jnp.bfloat16)
    w1_bf = w1.astype(jnp.bfloat16)
    b1_f = b1.astype(jnp.float32).reshape(1, HIDDEN_DIM)

    # Zero-pad the 2-wide output projection to 128 lanes (done once, host side).
    w2_pad = jnp.zeros((HIDDEN_DIM, OUT_PAD), jnp.bfloat16)
    w2_pad = w2_pad.at[:, :OUT_DIM].set(w2.astype(jnp.bfloat16))
    b2_pad = jnp.zeros((1, OUT_PAD), jnp.float32)
    b2_pad = b2_pad.at[:, :OUT_DIM].set(b2.astype(jnp.float32).reshape(1, OUT_DIM))

    # Batch tile: 256 rows fills an MXU pass; small batches just round up to 8.
    if B >= 256:
        tb = 256
    else:
        tb = max(8, ((B + 7) // 8) * 8)
    b_pad = ((B + tb - 1) // tb) * tb
    if b_pad != B:
        x_bf = jnp.pad(x_bf, ((0, b_pad - B), (0, 0)))

    out = pl.pallas_call(
        _agent_mlp_kernel,
        out_shape=jax.ShapeDtypeStruct((b_pad, OUT_PAD), jnp.float32),
        grid=(b_pad // tb,),
        in_specs=[
            pl.BlockSpec((tb, INPUT_DIM), lambda i: (i, 0)),          # x tiles stream
            pl.BlockSpec((INPUT_DIM, HIDDEN_DIM), lambda i: (0, 0)),  # w1 resident
            pl.BlockSpec((1, HIDDEN_DIM), lambda i: (0, 0)),          # b1 resident
            pl.BlockSpec((HIDDEN_DIM, OUT_PAD), lambda i: (0, 0)),    # w2 resident
            pl.BlockSpec((1, OUT_PAD), lambda i: (0, 0)),             # b2 resident
        ],
        out_specs=pl.BlockSpec((tb, OUT_PAD), lambda i: (i, 0)),
        compiler_params=pltpu.CompilerParams(
            dimension_semantics=("parallel",),   # megacore sharding on v7x
            vmem_limit_bytes=16 << 20,
        ),
    )(x_bf, w1_bf, b1_f, w2_pad, b2_pad)

    return out[:B, :OUT_DIM]


def init_params(key):
    """Deterministic init mimicking torch.nn.Linear (uniform +/- 1/sqrt(fan_in))."""
    k1, k2, k3, k4 = jax.random.split(key, 4)
    bound1 = 1.0 / math.sqrt(INPUT_DIM)
    bound2 = 1.0 / math.sqrt(HIDDEN_DIM)
    w1 = jax.random.uniform(k1, (INPUT_DIM, HIDDEN_DIM), jnp.float32,
                            minval=-bound1, maxval=bound1)
    b1 = jax.random.uniform(k2, (1, HIDDEN_DIM), jnp.float32,
                            minval=-bound1, maxval=bound1)
    w2 = jax.random.uniform(k3, (HIDDEN_DIM, OUT_DIM), jnp.float32,
                            minval=-bound2, maxval=bound2)
    b2 = jax.random.uniform(k4, (1, OUT_DIM), jnp.float32,
                            minval=-bound2, maxval=bound2)
    return w1, b1, w2, b2


def reference_forward(x, w1, b1, w2, b2):
    # Reference with the same bf16 matmul-input / f32-accumulate recipe.
    h = jnp.dot(x.astype(jnp.bfloat16), w1.astype(jnp.bfloat16),
                preferred_element_type=jnp.float32) + b1
    h = jnp.maximum(h, LEAKY_SLOPE * h)
    return jnp.dot(h.astype(jnp.bfloat16), w2.astype(jnp.bfloat16),
                   preferred_element_type=jnp.float32) + b2


if __name__ == "__main__":
    key = jax.random.PRNGKey(0)
    k_params, k_x = jax.random.split(key)

    w1, b1, w2, b2 = init_params(k_params)

    # input_obs: (batch, input_dim) observations, small batch
    B = 8
    x = jax.random.normal(k_x, (B, INPUT_DIM), jnp.float32)

    out = agent_forward(x, w1, b1, w2, b2)
    out = jax.block_until_ready(out)

    ref = reference_forward(x, w1, b1, w2, b2)
    assert out.shape == (B, OUT_DIM)
    assert jnp.allclose(out, ref, atol=2e-2, rtol=2e-2), "mismatch vs reference"

    print("KERNEL_OK")
</pallas_src>

<mosaic_0001>
module attributes {stable_mosaic.version = 11 : i64} {
  func.func @_agent_mlp_kernel(%arg0: i32, %arg1: memref<8x768xbf16, #tpu.memory_space<vmem>>, %arg2: memref<768x512xbf16, #tpu.memory_space<vmem>>, %arg3: memref<1x512xf32, #tpu.memory_space<vmem>>, %arg4: memref<512x128xbf16, #tpu.memory_space<vmem>>, %arg5: memref<1x128xf32, #tpu.memory_space<vmem>>, %arg6: memref<8x128xf32, #tpu.memory_space<vmem>>) attributes {dimension_semantics = [#tpu.dimension_semantics<parallel>], iteration_bounds = array<i64: 1>, scalar_prefetch = 0 : i64, scratch_operands = 0 : i64, tpu.core_type = #tpu.core_type<tc>, window_params = [{transform_indices = @transform_0, window_bounds = array<i64: 8, 768>}, {pipeline_mode = #tpu.pipeline_mode<synchronous>, transform_indices = @transform_1, window_bounds = array<i64: 768, 512>}, {pipeline_mode = #tpu.pipeline_mode<synchronous>, transform_indices = @transform_2, window_bounds = array<i64: 1, 512>}, {pipeline_mode = #tpu.pipeline_mode<synchronous>, transform_indices = @transform_3, window_bounds = array<i64: 512, 128>}, {pipeline_mode = #tpu.pipeline_mode<synchronous>, transform_indices = @transform_4, window_bounds = array<i64: 1, 128>}, {transform_indices = @transform_5, window_bounds = array<i64: 8, 128>}]} {
    %c0 = arith.constant 0 : index
    %c0_0 = arith.constant 0 : index
    %0 = vector.load %arg1[%c0, %c0_0] : memref<8x768xbf16, #tpu.memory_space<vmem>>, vector<8x768xbf16>
    %c0_1 = arith.constant 0 : index
    %c0_2 = arith.constant 0 : index
    %1 = vector.load %arg2[%c0_1, %c0_2] : memref<768x512xbf16, #tpu.memory_space<vmem>>, vector<768x512xbf16>
    %cst = arith.constant dense<0.000000e+00> : vector<8x512xf32>
    %2 = tpu.matmul %0, %1, %cst {dimension_numbers = #tpu.dot_dimension_numbers<[1], [0], [0], [1], [0, 0, 1, 1], [], []>} : vector<8x768xbf16>, vector<768x512xbf16>, vector<8x512xf32> -> vector<8x512xf32>
    %c0_3 = arith.constant 0 : index
    %c0_4 = arith.constant 0 : index
    %3 = vector.load %arg3[%c0_3, %c0_4] : memref<1x512xf32, #tpu.memory_space<vmem>>, vector<1x512xf32>
    %4 = vector.broadcast %3 : vector<1x512xf32> to vector<8x512xf32>
    %5 = arith.addf %2, %4 : vector<8x512xf32>
    %cst_5 = arith.constant 0.00999999977 : f32
    %6 = vector.broadcast %cst_5 : f32 to vector<8x512xf32>
    %7 = arith.mulf %6, %5 : vector<8x512xf32>
    %8 = arith.maximumf %5, %7 : vector<8x512xf32>
    %9 = arith.truncf %8 : vector<8x512xf32> to vector<8x512xbf16>
    %c0_6 = arith.constant 0 : index
    %c0_7 = arith.constant 0 : index
    %10 = vector.load %arg4[%c0_6, %c0_7] : memref<512x128xbf16, #tpu.memory_space<vmem>>, vector<512x128xbf16>
    %cst_8 = arith.constant dense<0.000000e+00> : vector<8x128xf32>
    %11 = tpu.matmul %9, %10, %cst_8 {dimension_numbers = #tpu.dot_dimension_numbers<[1], [0], [0], [1], [0, 0, 1, 1], [], []>} : vector<8x512xbf16>, vector<512x128xbf16>, vector<8x128xf32> -> vector<8x128xf32>
    %c0_9 = arith.constant 0 : index
    %c0_10 = arith.constant 0 : index
    %12 = vector.load %arg5[%c0_9, %c0_10] : memref<1x128xf32, #tpu.memory_space<vmem>>, vector<1x128xf32>
    %13 = vector.broadcast %12 : vector<1x128xf32> to vector<8x128xf32>
    %14 = arith.addf %11, %13 : vector<8x128xf32>
    %c0_11 = arith.constant 0 : index
    %c0_12 = arith.constant 0 : index
    %15 = vector.load %arg6[%c0_11, %c0_12] : memref<8x128xf32, #tpu.memory_space<vmem>>, vector<8x128xf32>
    tpu.vector_store %arg6[%c0_11, %c0_12], %14 {strides = array<i32>} : memref<8x128xf32, #tpu.memory_space<vmem>>, vector<8x128xf32>,
    return
  }
  func.func @transform_0(%arg0: i32) -> (i32, i32) {
    %c0_i32 = arith.constant 0 : i32
    %c0_i32_0 = arith.constant 0 : i32
    return %arg0, %c0_i32 : i32, i32
  }
  func.func @transform_1(%arg0: i32) -> (i32, i32) {
    %c0_i32 = arith.constant 0 : i32
    %c0_i32_0 = arith.constant 0 : i32
    %c0_i32_1 = arith.constant 0 : i32
    return %c0_i32, %c0_i32_0 : i32, i32
  }
  func.func @transform_2(%arg0: i32) -> (i32, i32) {
    %c0_i32 = arith.constant 0 : i32
    %c0_i32_0 = arith.constant 0 : i32
    %c0_i32_1 = arith.constant 0 : i32
    return %c0_i32, %c0_i32_0 : i32, i32
  }
  func.func @transform_3(%arg0: i32) -> (i32, i32) {
    %c0_i32 = arith.constant 0 : i32
    %c0_i32_0 = arith.constant 0 : i32
    %c0_i32_1 = arith.constant 0 : i32
    return %c0_i32, %c0_i32_0 : i32, i32
  }
  func.func @transform_4(%arg0: i32) -> (i32, i32) {
    %c0_i32 = arith.constant 0 : i32
    %c0_i32_0 = arith.constant 0 : i32
    %c0_i32_1 = arith.constant 0 : i32
    return %c0_i32, %c0_i32_0 : i32, i32
  }
  func.func @transform_5(%arg0: i32) -> (i32, i32) {
    %c0_i32 = arith.constant 0 : i32
    %c0_i32_0 = arith.constant 0 : i32
    return %arg0, %c0_i32 : i32, i32
  }
}

</mosaic_0001>

<bundles_post_ra>
// kernel: tpu_custom_call.1
= control target key start
LH: loop header
LB: loop body
LE: loop exit
PB: predicated region body
PF: predicated region fallthrough
CT: control target
= control target key end

     0   :  { %10 = vsyncpa [#allocation3], 0  ;;  %s2704_s0 = inlined_call_operand.hbm [shape: bf16[8,768], index: 0, kind: input, shape index: {}]   ;;  %s2705_s1 = inlined_call_operand.hbm [shape: bf16[768,512], index: 1, kind: input, shape index: {}]   ;;  %s2706_s2 = inlined_call_operand.vmem [shape: f32[1,512], index: 2, kind: input, shape index: {}]   ;;  %s2707_s3 = inlined_call_operand.hbm [shape: bf16[512,128], index: 3, kind: input, shape index: {}]   ;;  %s2708_s4 = inlined_call_operand.vmem [shape: f32[1,128], index: 4, kind: input, shape index: {}]   ;;  %s2709_s5 = inlined_call_operand.hbm [shape: f32[8,128], index: 5, kind: output, shape index: {}]  }
   0x1   :  { %11 = vsyncpa [#allocation6], 0 }
   0x2   :  { %12 = vsyncpa [#allocation4], 0  ;;  %s2600_s18 = smov [#allocation5]   ;;  %s2506_s22 = scalar_lea.hbm %s2705_s1, 24576 }
   0x3   :  { %s28_s19 = sshll.u32 %s2600_s18, 4  ;;  %p2507_p0 = scmp.ne.s32.totalorder %s2705_s1, %s2506_s22  ;;  %s29_s19 = int_to_ptr.vmem [resolvable:$true] %s28_s19 }
   0x4   :  { %p2510_p1 = scmp.lt.u32.totalorder %s2506_s22, %s2705_s1 }
   0x6   :  { %p2512_p2 = pnand %p2510_p1, %p2507_p0 }
   0x8   :  { %2515 = shalt.err (!%p2512_p2)
}
   0x9   :  { %s2516_s27 = scalar_lea.vmem %s29_s19, 24576  ;;  %p2521_p4 = scmp.lt.s32.totalorder %s29_s19, %s29_s19 }
   0xa   :  { %p2517_p3 = scmp.ne.s32.totalorder %s29_s19, %s2516_s27  ;;  %p2522_p5 = scmp.lt.s32.totalorder %s2516_s27, %s2516_s27 }
   0xc   :  { %p2523_p6 = por %p2522_p5, %p2521_p4 }
   0xe   :  { %p2524_p7 = pnand %p2523_p6, %p2517_p3 }
  0x10   :  { %2527 = shalt.err (!%p2524_p7)
}
  0x11   :  { %s2601_s28 = smov 256   ;;  %s2602_s29 = smov 16  }
  0x12   :  { %34 = dma.hbm_to_vmem [thread:$0]  %s2705_s1, 24576, %s29_s19, [#allocation6], %s2601_s28, %s2601_s28, %s2602_s29  }
  0x13   :  { %s2603_s7 = smov [#allocation2]   ;;  %s2604_s9 = smov [#allocation7]  }
  0x14   :  { %s19_s8 = sshll.u32 %s2603_s7, 4  ;;  %s42_s10 = sshll.u32 %s2604_s9, 4  ;;  %s20_s8 = int_to_ptr.vmem [resolvable:$true] %s19_s8  ;;  %s43_s10 = int_to_ptr.vmem [resolvable:$true] %s42_s10 }
  0x15   :  { %s2528_s13 = scalar_lea.hbm %s2704_s0, 384 }
  0x16   :  { %p2529_p8 = scmp.ne.s32.totalorder %s2704_s0, %s2528_s13  ;;  %p2532_p9 = scmp.lt.u32.totalorder %s2528_s13, %s2704_s0 }
  0x18   :  { %p2534_p10 = pnand %p2532_p9, %p2529_p8 }
  0x1a   :  { %2537 = shalt.err (!%p2534_p10)
}
  0x1b   :  { %s2538_s1 = scalar_lea.vmem %s20_s8, 384  ;;  %p2543_p12 = scmp.lt.s32.totalorder %s20_s8, %s20_s8 }
  0x1c   :  { %p2539_p11 = scmp.ne.s32.totalorder %s20_s8, %s2538_s1  ;;  %p2544_p13 = scmp.lt.s32.totalorder %s2538_s1, %s2538_s1 }
  0x1e   :  { %p2545_p0 = por %p2544_p13, %p2543_p12 }
  0x20   :  { %p2546_p1 = pnand %p2545_p0, %p2539_p11 }
  0x22   :  { %2549 = shalt.err (!%p2546_p1)
}
  0x23   :  { %22 = dma.hbm_to_vmem [thread:$0]  %s2704_s0, 384, %s20_s8, [#allocation3]  }
  0x24   :  { %s2550_s22 = scalar_lea.hbm %s2707_s3, 4096 }
  0x25   :  { %p2551_p2 = scmp.ne.s32.totalorder %s2707_s3, %s2550_s22  ;;  %p2554_p3 = scmp.lt.u32.totalorder %s2550_s22, %s2707_s3 }
  0x27   :  { %p2556_p4 = pnand %p2554_p3, %p2551_p2 }
  0x29   :  { %2559 = shalt.err (!%p2556_p4)
}
  0x2a   :  { %s2560_s27 = scalar_lea.vmem %s43_s10, 4096  ;;  %p2565_p6 = scmp.lt.s32.totalorder %s43_s10, %s43_s10 }
  0x2b   :  { %p2561_p5 = scmp.ne.s32.totalorder %s43_s10, %s2560_s27  ;;  %p2566_p7 = scmp.lt.s32.totalorder %s2560_s27, %s2560_s27 }
  0x2d   :  { %p2567_p8 = por %p2566_p7, %p2565_p6 }
  0x2f   :  { %p2568_p9 = pnand %p2567_p8, %p2561_p5 }
  0x31   :  { %2571 = shalt.err (!%p2568_p9)
}
  0x32   :  { %s2605_s0 = smov 64   ;;  %s2606_s28 = smov 4  }
  0x33   :  { %48 = dma.hbm_to_vmem [thread:$0]  %s2707_s3, 4096, %s43_s10, [#allocation6], %s2605_s0, %s2605_s0, %s2606_s28  }
  0x34   :  { %2594 = dma.done.wait [#allocation3], 384  }
  0x35   :  { %2595 = vsyncadd [#allocation3], 4294966912 }
  0x36   :  { %2596 = dma.done.wait [#allocation6], 28672  }
  0x37   :  { %2597 = vsyncadd [#allocation6], 4294938624  ;;  %v2180_v0 = vld [vmem:[#allocation5 + $0x4] ss:$16 sps:$4 sm:$0xff]   ;;  %v2182_v1 = vld [vmem:[#allocation5 + $0xc] ss:$16 sps:$4 sm:$0xff]  }
  0x38   :  { %1259 = vmatprep.subr.bf16.mxu0 %v2180_v0  ;;  %v2184_v2 = vld [vmem:[#allocation5] ss:$16 sps:$4 sm:$0xff]   ;;  %v2185_v3 = vld [vmem:[#allocation5 + $0x8] ss:$16 sps:$4 sm:$0xff]   ;;  %1382 = vmatprep.subr.bf16.mxu1 %v2182_v1  ;;  %v2186_v4 = vld [vmem:[#allocation5 + $0x24] ss:$16 sps:$4 sm:$0xff]  }
  0x39   :  { %1260 = vmatpush1.bf16.msra.mxu0 %v2184_v2  ;;  %1383 = vmatpush1.bf16.msra.mxu1 %v2185_v3  ;;  %v2188_v5 = vld [vmem:[#allocation5 + $0x2c] ss:$16 sps:$4 sm:$0xff]   ;;  %v2190_v6 = vld [vmem:[#allocation5 + $0x20] ss:$16 sps:$4 sm:$0xff]   ;;  %v2191_v7 = vld [vmem:[#allocation5 + $0x28] ss:$16 sps:$4 sm:$0xff]  }
  0x3a   :  { %1261 = vmatprep.subr.bf16.mxu0 %v2186_v4  ;;  %1384 = vmatprep.subr.bf16.mxu1 %v2188_v5  ;;  %v2192_v8 = vld [vmem:[#allocation5 + $0x44] ss:$16 sps:$4 sm:$0xff]   ;;  %v2194_v9 = vld [vmem:[#allocation5 + $0x4c] ss:$16 sps:$4 sm:$0xff]   ;;  %v2196_v10 = vld [vmem:[#allocation5 + $0x40] ss:$16 sps:$4 sm:$0xff]  }
  0x3b   :  { %v2197_v11 = vld [vmem:[#allocation5 + $0x48] ss:$16 sps:$4 sm:$0xff]   ;;  %v2198_v12 = vld [vmem:[#allocation5 + $0x64] ss:$16 sps:$4 sm:$0xff]   ;;  %v2200_v13 = vld [vmem:[#allocation5 + $0x6c] ss:$16 sps:$4 sm:$0xff]  }
  0x3c   :  { %v2202_v14 = vld [vmem:[#allocation5 + $0x60] ss:$16 sps:$4 sm:$0xff]   ;;  %v2203_v15 = vld [vmem:[#allocation5 + $0x68] ss:$16 sps:$4 sm:$0xff]   ;;  %v2204_v16 = vld [vmem:[#allocation5 + $0x84] ss:$16 sps:$4 sm:$0xff]  }
  0x3d   :  { %1262 = vmatpush1.bf16.msra.mxu0 %v2190_v6  ;;  %1385 = vmatpush1.bf16.msra.mxu1 %v2191_v7  ;;  %v2206_v17 = vld [vmem:[#allocation5 + $0x8c] ss:$16 sps:$4 sm:$0xff]   ;;  %v2208_v18 = vld [vmem:[#allocation5 + $0x80] ss:$16 sps:$4 sm:$0xff]   ;;  %v2209_v19 = vld [vmem:[#allocation5 + $0x88] ss:$16 sps:$4 sm:$0xff]  }
  0x3e   :  { %1263 = vmatprep.subr.bf16.mxu0 %v2192_v8  ;;  %1386 = vmatprep.subr.bf16.mxu1 %v2194_v9  ;;  %v2210_v20 = vld [vmem:[#allocation5 + $0xa4] ss:$16 sps:$4 sm:$0xff]   ;;  %v2212_v21 = vld [vmem:[#allocation5 + $0xac] ss:$16 sps:$4 sm:$0xff]   ;;  %v2214_v22 = vld [vmem:[#allocation5 + $0xa0] ss:$16 sps:$4 sm:$0xff]  }
  0x3f   :  { %v2215_v23 = vld [vmem:[#allocation5 + $0xa8] ss:$16 sps:$4 sm:$0xff]   ;;  %v2216_v24 = vld [vmem:[#allocation5 + $0xc4] ss:$16 sps:$4 sm:$0xff]   ;;  %v2218_v25 = vld [vmem:[#allocation5 + $0xcc] ss:$16 sps:$4 sm:$0xff]  }
  0x40   :  { %v2220_v26 = vld [vmem:[#allocation5 + $0xc0] ss:$16 sps:$4 sm:$0xff]   ;;  %v2221_v27 = vld [vmem:[#allocation5 + $0xc8] ss:$16 sps:$4 sm:$0xff]   ;;  %v2222_v28 = vld [vmem:[#allocation5 + $0xe4] ss:$16 sps:$4 sm:$0xff]  }
  0x41   :  { %1264 = vmatpush1.bf16.msra.mxu0 %v2196_v10  ;;  %1387 = vmatpush1.bf16.msra.mxu1 %v2197_v11  ;;  %v2224_v29 = vld [vmem:[#allocation5 + $0xec] ss:$16 sps:$4 sm:$0xff]   ;;  %v2226_v30 = vld [vmem:[#allocation5 + $0xe0] ss:$16 sps:$4 sm:$0xff]   ;;  %v2227_v31 = vld [vmem:[#allocation5 + $0xe8] ss:$16 sps:$4 sm:$0xff]  }
  0x42   :  { %1265 = vmatprep.subr.bf16.mxu0 %v2198_v12  ;;  %1388 = vmatprep.subr.bf16.mxu1 %v2200_v13  ;;  %v2228_v32 = vld [vmem:[#allocation5 + $0x104] ss:$16 sps:$4 sm:$0xff]   ;;  %v2230_v33 = vld [vmem:[#allocation5 + $0x10c] ss:$16 sps:$4 sm:$0xff]   ;;  %v2232_v34 = vld [vmem:[#allocation5 + $0x100] ss:$16 sps:$4 sm:$0xff]  }
  0x43   :  { %v2233_v35 = vld [vmem:[#allocation5 + $0x108] ss:$16 sps:$4 sm:$0xff]   ;;  %v2234_v36 = vld [vmem:[#allocation5 + $0x124] ss:$16 sps:$4 sm:$0xff]   ;;  %v2236_v37 = vld [vmem:[#allocation5 + $0x12c] ss:$16 sps:$4 sm:$0xff]  }
  0x44   :  { %v2238_v38 = vld [vmem:[#allocation5 + $0x120] ss:$16 sps:$4 sm:$0xff]   ;;  %v2239_v39 = vld [vmem:[#allocation5 + $0x128] ss:$16 sps:$4 sm:$0xff]   ;;  %v2240_v40 = vld [vmem:[#allocation5 + $0x144] ss:$16 sps:$4 sm:$0xff]  }
  0x45   :  { %1266 = vmatpush1.bf16.msra.mxu0 %v2202_v14  ;;  %1389 = vmatpush1.bf16.msra.mxu1 %v2203_v15  ;;  %v2242_v41 = vld [vmem:[#allocation5 + $0x14c] ss:$16 sps:$4 sm:$0xff]   ;;  %v2244_v42 = vld [vmem:[#allocation5 + $0x140] ss:$16 sps:$4 sm:$0xff]   ;;  %v2245_v43 = vld [vmem:[#allocation5 + $0x148] ss:$16 sps:$4 sm:$0xff]  }
  0x46   :  { %1267 = vmatprep.subr.bf16.mxu0 %v2204_v16  ;;  %1390 = vmatprep.subr.bf16.mxu1 %v2206_v17  ;;  %v2246_v44 = vld [vmem:[#allocation5 + $0x164] ss:$16 sps:$4 sm:$0xff]   ;;  %v2248_v45 = vld [vmem:[#allocation5 + $0x16c] ss:$16 sps:$4 sm:$0xff]   ;;  %v2250_v47 = vld [vmem:[#allocation5 + $0x160] ss:$16 sps:$4 sm:$0xff]  }
  0x47   :  { %v61_v46 = vld [vmem:[#allocation2] sm:$0xff]  ;;  %v2252_v50 = vld [vmem:[#allocation5 + $0x184] ss:$16 sps:$4 sm:$0xff]   ;;  %v2256_v52 = vld [vmem:[#allocation5 + $0x180] ss:$16 sps:$4 sm:$0xff]   ;;  %s2607_s8 = smov [#allocation8]  }
  0x48   :  { %v1878_v48 = vcombine.high %v61_v46, %v61_v46  ;;  %v2251_v49 = vld [vmem:[#allocation5 + $0x168] ss:$16 sps:$4 sm:$0xff]   ;;  %v2254_v51 = vld [vmem:[#allocation5 + $0x18c] ss:$16 sps:$4 sm:$0xff]   ;;  %v2258_v54 = vld [vmem:[#allocation5 + $0x1a4] ss:$16 sps:$4 sm:$0xff]   ;;  %v1877_v4 = vcombine.low %v61_v46, %v61_v46 }
  0x49   :  { %1268 = vmatpush1.bf16.msra.mxu0 %v2208_v18  ;;  %1391 = vmatpush1.bf16.msra.mxu1 %v2209_v19  ;;  %v2257_v53 = vld [vmem:[#allocation5 + $0x188] ss:$16 sps:$4 sm:$0xff]   ;;  %v2260_v55 = vld [vmem:[#allocation5 + $0x1ac] ss:$16 sps:$4 sm:$0xff]   ;;  %v2262_v56 = vld [vmem:[#allocation5 + $0x1a0] ss:$16 sps:$4 sm:$0xff]  }
  0x4a   :  { %1269 = vmatprep.subr.bf16.mxu0 %v2210_v20  ;;  %1392 = vmatprep.subr.bf16.mxu1 %v2212_v21  ;;  %v2263_v57 = vld [vmem:[#allocation5 + $0x1a8] ss:$16 sps:$4 sm:$0xff]   ;;  %v2264_v58 = vld [vmem:[#allocation5 + $0x1c4] ss:$16 sps:$4 sm:$0xff]   ;;  %v2266_v59 = vld [vmem:[#allocation5 + $0x1cc] ss:$16 sps:$4 sm:$0xff]  }
  0x4b   :  { %1291 = vmatprep.mubr.bf16.mxu0 %v1878_v48  ;;  %1414 = vmatprep.mubr.bf16.mxu1 %v1878_v48  ;;  %v2268_v60 = vld [vmem:[#allocation5 + $0x1c0] ss:$16 sps:$4 sm:$0xff]   ;;  %v2269_v61 = vld [vmem:[#allocation5 + $0x1c8] ss:$16 sps:$4 sm:$0xff]   ;;  %v2270_v62 = vld [vmem:[#allocation5 + $0x1e4] ss:$16 sps:$4 sm:$0xff]  }
  0x4c   :  { %v2272_v63 = vld [vmem:[#allocation5 + $0x1ec] ss:$16 sps:$4 sm:$0xff]   ;;  %v2274_v0 = vld [vmem:[#allocation5 + $0x1e0] ss:$16 sps:$4 sm:$0xff]   ;;  %v2275_v1 = vld [vmem:[#allocation5 + $0x1e8] ss:$16 sps:$4 sm:$0xff]  }
  0x4d   :  { %1270 = vmatpush1.bf16.msra.mxu0 %v2214_v22  ;;  %1393 = vmatpush1.bf16.msra.mxu1 %v2215_v23  ;;  %v2280_v2 = vld [vmem:[#allocation5 + $0x204] ss:$16 sps:$4 sm:$0xff]   ;;  %v2283_v3 = vld [vmem:[#allocation5 + $0x20c] ss:$16 sps:$4 sm:$0xff]   ;;  %v2278_v5 = vld [vmem:[#allocation5 + $0x200] ss:$16 sps:$4 sm:$0xff]  }
  0x4e   :  { %1271 = vmatprep.subr.bf16.mxu0 %v2216_v24  ;;  %1394 = vmatprep.subr.bf16.mxu1 %v2218_v25  ;;  %v2281_v6 = vld [vmem:[#allocation5 + $0x208] ss:$16 sps:$4 sm:$0xff]   ;;  %v2286_v7 = vld [vmem:[#allocation5 + $0x224] ss:$16 sps:$4 sm:$0xff]   ;;  %v2289_v8 = vld [vmem:[#allocation5 + $0x22c] ss:$16 sps:$4 sm:$0xff]  }
  0x4f   :  { %v2284_v9 = vld [vmem:[#allocation5 + $0x220] ss:$16 sps:$4 sm:$0xff]   ;;  %v2287_v10 = vld [vmem:[#allocation5 + $0x228] ss:$16 sps:$4 sm:$0xff]   ;;  %v2292_v11 = vld [vmem:[#allocation5 + $0x244] ss:$16 sps:$4 sm:$0xff]  }
  0x50   :  { %v2295_v12 = vld [vmem:[#allocation5 + $0x24c] ss:$16 sps:$4 sm:$0xff]   ;;  %v2290_v13 = vld [vmem:[#allocation5 + $0x240] ss:$16 sps:$4 sm:$0xff]   ;;  %v2293_v14 = vld [vmem:[#allocation5 + $0x248] ss:$16 sps:$4 sm:$0xff]  }
  0x51   :  { %1272 = vmatpush1.bf16.msra.mxu0 %v2220_v26  ;;  %1395 = vmatpush1.bf16.msra.mxu1 %v2221_v27  ;;  %v2298_v15 = vld [vmem:[#allocation5 + $0x264] ss:$16 sps:$4 sm:$0xff]   ;;  %v2301_v16 = vld [vmem:[#allocation5 + $0x26c] ss:$16 sps:$4 sm:$0xff]   ;;  %v2296_v17 = vld [vmem:[#allocation5 + $0x260] ss:$16 sps:$4 sm:$0xff]  }
  0x52   :  { %1273 = vmatprep.subr.bf16.mxu0 %v2222_v28  ;;  %1396 = vmatprep.subr.bf16.mxu1 %v2224_v29  ;;  %v2299_v18 = vld [vmem:[#allocation5 + $0x268] ss:$16 sps:$4 sm:$0xff]   ;;  %v2304_v19 = vld [vmem:[#allocation5 + $0x284] ss:$16 sps:$4 sm:$0xff]   ;;  %v2307_v20 = vld [vmem:[#allocation5 + $0x28c] ss:$16 sps:$4 sm:$0xff]  }
  0x53   :  { %v2302_v21 = vld [vmem:[#allocation5 + $0x280] ss:$16 sps:$4 sm:$0xff]   ;;  %v2305_v22 = vld [vmem:[#allocation5 + $0x288] ss:$16 sps:$4 sm:$0xff]   ;;  %v2310_v23 = vld [vmem:[#allocation5 + $0x2a4] ss:$16 sps:$4 sm:$0xff]  }
  0x54   :  { %v2313_v24 = vld [vmem:[#allocation5 + $0x2ac] ss:$16 sps:$4 sm:$0xff]   ;;  %v2308_v25 = vld [vmem:[#allocation5 + $0x2a0] ss:$16 sps:$4 sm:$0xff]   ;;  %v2311_v26 = vld [vmem:[#allocation5 + $0x2a8] ss:$16 sps:$4 sm:$0xff]  }
  0x55   :  { %1274 = vmatpush1.bf16.msra.mxu0 %v2226_v30  ;;  %1397 = vmatpush1.bf16.msra.mxu1 %v2227_v31  ;;  %v2316_v27 = vld [vmem:[#allocation5 + $0x2c4] ss:$16 sps:$4 sm:$0xff]   ;;  %v2319_v28 = vld [vmem:[#allocation5 + $0x2cc] ss:$16 sps:$4 sm:$0xff]   ;;  %v2314_v31 = vld [vmem:[#allocation5 + $0x2c0] ss:$16 sps:$4 sm:$0xff]  }
  0x56   :  { %1275 = vmatprep.subr.bf16.mxu0 %v2228_v32  ;;  %1398 = vmatprep.subr.bf16.mxu1 %v2230_v33  ;;  %v2674_v29 = vld [vmem:[#allocation2 + $0x8] sm:$0xff]  ;;  %v2317_v32 = vld [vmem:[#allocation5 + $0x2c8] ss:$16 sps:$4 sm:$0xff]   ;;  %v2343_v46 = vld [vmem:[#allocation5 + $0x34c] ss:$16 sps:$4 sm:$0xff]   ;;  %s1867_s9 = sshll.u32 %s2607_s8, 4  ;;  %s1868_s9 = int_to_ptr.vmem [resolvable:$true] %s1867_s9 }
  0x57   :  { %v1880_v30 = vcombine.high %v2674_v29, %v2674_v29  ;;  %v2322_v33 = vld [vmem:[#allocation5 + $0x2e4] ss:$16 sps:$4 sm:$0xff]   ;;  %v2341_v48 = vld [vmem:[#allocation5 + $0x348] ss:$16 sps:$4 sm:$0xff]   ;;  %s2572_s10 = scalar_lea.vmem %s1868_s9, 128  ;;  %p2577_p11 = scmp.lt.s32.totalorder %s1868_s9, %s1868_s9 }
  0x58   :  { %p2573_p10 = scmp.ne.s32.totalorder %s1868_s9, %s2572_s10  ;;  %p2578_p12 = scmp.lt.s32.totalorder %s2572_s10, %s2572_s10 }
  0x59   :  { %1276 = vmatpush1.bf16.msra.mxu0 %v2232_v34  ;;  %1399 = vmatpush1.bf16.msra.mxu1 %v2233_v35  ;;  %v2325_v34 = vld [vmem:[#allocation5 + $0x2ec] ss:$16 sps:$4 sm:$0xff]   ;;  %v2320_v35 = vld [vmem:[#allocation5 + $0x2e0] ss:$16 sps:$4 sm:$0xff]  }
  0x5a   :  { %1277 = vmatprep.subr.bf16.mxu0 %v2234_v36  ;;  %1400 = vmatprep.subr.bf16.mxu1 %v2236_v37  ;;  %v2323_v36 = vld [vmem:[#allocation5 + $0x2e8] ss:$16 sps:$4 sm:$0xff]   ;;  %v2328_v37 = vld [vmem:[#allocation5 + $0x304] ss:$16 sps:$4 sm:$0xff]   ;;  %p2579_p13 = por %p2578_p12, %p2577_p11 }
  0x5c   :  { %p2580_p0 = pnand %p2579_p13, %p2573_p10 }
  0x5d   :  { %1278 = vmatpush1.bf16.msra.mxu0 %v2238_v38  ;;  %1401 = vmatpush1.bf16.msra.mxu1 %v2239_v39  ;;  %v2331_v38 = vld [vmem:[#allocation5 + $0x30c] ss:$16 sps:$4 sm:$0xff]   ;;  %v2326_v39 = vld [vmem:[#allocation5 + $0x300] ss:$16 sps:$4 sm:$0xff]  }
  0x5e   :  { %1279 = vmatprep.subr.bf16.mxu0 %v2240_v40  ;;  %1402 = vmatprep.subr.bf16.mxu1 %v2242_v41  ;;  %v2329_v40 = vld [vmem:[#allocation5 + $0x308] ss:$16 sps:$4 sm:$0xff]   ;;  %v2334_v41 = vld [vmem:[#allocation5 + $0x324] ss:$16 sps:$4 sm:$0xff]  }
  0x61   :  { %1280 = vmatpush1.bf16.msra.mxu0 %v2244_v42  ;;  %1403 = vmatpush1.bf16.msra.mxu1 %v2245_v43  ;;  %v2337_v42 = vld [vmem:[#allocation5 + $0x32c] ss:$16 sps:$4 sm:$0xff]   ;;  %v2332_v43 = vld [vmem:[#allocation5 + $0x320] ss:$16 sps:$4 sm:$0xff]  }
  0x62   :  { %1281 = vmatprep.subr.bf16.mxu0 %v2246_v44  ;;  %1404 = vmatprep.subr.bf16.mxu1 %v2248_v45  ;;  %v2335_v44 = vld [vmem:[#allocation5 + $0x328] ss:$16 sps:$4 sm:$0xff]   ;;  %v2340_v45 = vld [vmem:[#allocation5 + $0x344] ss:$16 sps:$4 sm:$0xff]  }
  0x65   :  { %1282 = vmatpush1.bf16.msra.mxu0 %v2250_v47  ;;  %1405 = vmatpush1.bf16.msra.mxu1 %v2251_v49  ;;  %v2338_v47 = vld [vmem:[#allocation5 + $0x340] ss:$16 sps:$4 sm:$0xff]   ;;  %v2346_v49 = vld [vmem:[#allocation5 + $0x364] ss:$16 sps:$4 sm:$0xff]  }
  0x66   :  { %1283 = vmatprep.subr.bf16.mxu0 %v2252_v50  ;;  %1406 = vmatprep.subr.bf16.mxu1 %v2254_v51  ;;  %v2349_v50 = vld [vmem:[#allocation5 + $0x36c] ss:$16 sps:$4 sm:$0xff]   ;;  %v2344_v51 = vld [vmem:[#allocation5 + $0x360] ss:$16 sps:$4 sm:$0xff]  }
  0x69   :  { %1284 = vmatpush1.bf16.msra.mxu0 %v2256_v52  ;;  %1407 = vmatpush1.bf16.msra.mxu1 %v2257_v53  ;;  %v2347_v52 = vld [vmem:[#allocation5 + $0x368] ss:$16 sps:$4 sm:$0xff]   ;;  %v2352_v53 = vld [vmem:[#allocation5 + $0x384] ss:$16 sps:$4 sm:$0xff]  }
  0x6a   :  { %1285 = vmatprep.subr.bf16.mxu0 %v2258_v54  ;;  %1408 = vmatprep.subr.bf16.mxu1 %v2260_v55  ;;  %v2355_v54 = vld [vmem:[#allocation5 + $0x38c] ss:$16 sps:$4 sm:$0xff]   ;;  %v2350_v55 = vld [vmem:[#allocation5 + $0x380] ss:$16 sps:$4 sm:$0xff]  }
  0x6d   :  { %1286 = vmatpush1.bf16.msra.mxu0 %v2262_v56  ;;  %1409 = vmatpush1.bf16.msra.mxu1 %v2263_v57  ;;  %v2353_v56 = vld [vmem:[#allocation5 + $0x388] ss:$16 sps:$4 sm:$0xff]   ;;  %v2358_v57 = vld [vmem:[#allocation5 + $0x3a4] ss:$16 sps:$4 sm:$0xff]  }
  0x6e   :  { %1287 = vmatprep.subr.bf16.mxu0 %v2264_v58  ;;  %1410 = vmatprep.subr.bf16.mxu1 %v2266_v59  ;;  %v2361_v58 = vld [vmem:[#allocation5 + $0x3ac] ss:$16 sps:$4 sm:$0xff]   ;;  %v2356_v59 = vld [vmem:[#allocation5 + $0x3a0] ss:$16 sps:$4 sm:$0xff]  }
  0x71   :  { %1288 = vmatpush1.bf16.msra.mxu0 %v2268_v60  ;;  %1411 = vmatpush1.bf16.msra.mxu1 %v2269_v61  ;;  %v2359_v60 = vld [vmem:[#allocation5 + $0x3a8] ss:$16 sps:$4 sm:$0xff]   ;;  %v2364_v61 = vld [vmem:[#allocation5 + $0x3c4] ss:$16 sps:$4 sm:$0xff]  }
  0x72   :  { %1289 = vmatprep.subr.bf16.mxu0 %v2270_v62  ;;  %1412 = vmatprep.subr.bf16.mxu1 %v2272_v63  ;;  %v2367_v62 = vld [vmem:[#allocation5 + $0x3cc] ss:$16 sps:$4 sm:$0xff]   ;;  %v2362_v63 = vld [vmem:[#allocation5 + $0x3c0] ss:$16 sps:$4 sm:$0xff]  }
  0x75   :  { %1290 = vmatpush1.bf16.msra.mxu0 %v2274_v0  ;;  %1413 = vmatpush1.bf16.msra.mxu1 %v2275_v1  ;;  %v2365_v0 = vld [vmem:[#allocation5 + $0x3c8] ss:$16 sps:$4 sm:$0xff]   ;;  %v2370_v1 = vld [vmem:[#allocation5 + $0x3e4] ss:$16 sps:$4 sm:$0xff]  }
  0x76   :  { %1300 = vmatprep.subr.bf16.mxu0 %v2280_v2  ;;  %1423 = vmatprep.subr.bf16.mxu1 %v2283_v3  ;;  %v2373_v2 = vld [vmem:[#allocation5 + $0x3ec] ss:$16 sps:$4 sm:$0xff]   ;;  %v2368_v3 = vld [vmem:[#allocation5 + $0x3e0] ss:$16 sps:$4 sm:$0xff]  }
  0x78   :  { %1292 = vmatmul.mubr.bf16.vlgmr.msra.gmra.mrb[0].mxu0 %v1877_v4  ;;  %1415 = vmatmul.mubr.bf16.vlgmr.msra.gmra.mrb[0].mxu1 %v1877_v4  ;;  %v2371_v4 = vld [vmem:[#allocation5 + $0x3e8] ss:$16 sps:$4 sm:$0xff]  }
  0x79   :  { %1301 = vmatpush1.bf16.msra.mxu0 %v2278_v5  ;;  %1424 = vmatpush1.bf16.msra.mxu1 %v2281_v6  ;;  %v2378_v5 = vld [vmem:[#allocation5 + $0x404] ss:$16 sps:$4 sm:$0xff]   ;;  %v2381_v6 = vld [vmem:[#allocation5 + $0x40c] ss:$16 sps:$4 sm:$0xff]  }
  0x7a   :  { %1302 = vmatprep.subr.bf16.mxu0 %v2286_v7  ;;  %1425 = vmatprep.subr.bf16.mxu1 %v2289_v8  ;;  %v1879_v7 = vcombine.low %v2674_v29, %v2674_v29  ;;  %v2376_v8 = vld [vmem:[#allocation5 + $0x400] ss:$16 sps:$4 sm:$0xff]   ;;  %v2411_v29 = vld [vmem:[#allocation5 + $0x4ac] ss:$16 sps:$4 sm:$0xff]  }
  0x7b   :  { %1332 = vmatprep.mubr.bf16.mxu0 %v1880_v30  ;;  %1455 = vmatprep.mubr.bf16.mxu1 %v1880_v30  ;;  %v2406_v30 = vld [vmem:[#allocation5 + $0x4a0] ss:$16 sps:$4 sm:$0xff]  }
  0x7d   :  { %1303 = vmatpush1.bf16.msra.mxu0 %v2284_v9  ;;  %1426 = vmatpush1.bf16.msra.mxu1 %v2287_v10  ;;  %v2379_v9 = vld [vmem:[#allocation5 + $0x408] ss:$16 sps:$4 sm:$0xff]   ;;  %v2384_v10 = vld [vmem:[#allocation5 + $0x424] ss:$16 sps:$4 sm:$0xff]  }
  0x7e   :  { %1304 = vmatprep.subr.bf16.mxu0 %v2292_v11  ;;  %1427 = vmatprep.subr.bf16.mxu1 %v2295_v12  ;;  %v2680_v11 = vld [vmem:[#allocation2 + $0x10] sm:$0xff] }
  0x7f   :  { %v2387_v12 = vld [vmem:[#allocation5 + $0x42c] ss:$16 sps:$4 sm:$0xff]  }
  0x81   :  { %1305 = vmatpush1.bf16.msra.mxu0 %v2290_v13  ;;  %1428 = vmatpush1.bf16.msra.mxu1 %v2293_v14  ;;  %v2382_v13 = vld [vmem:[#allocation5 + $0x420] ss:$16 sps:$4 sm:$0xff]   ;;  %v1882_v14 = vcombine.high %v2680_v11, %v2680_v11 }
  0x82   :  { %1306 = vmatprep.subr.bf16.mxu0 %v2298_v15  ;;  %1429 = vmatprep.subr.bf16.mxu1 %v2301_v16  ;;  %v2385_v15 = vld [vmem:[#allocation5 + $0x428] ss:$16 sps:$4 sm:$0xff]   ;;  %v2390_v16 = vld [vmem:[#allocation5 + $0x444] ss:$16 sps:$4 sm:$0xff]  }
  0x85   :  { %1307 = vmatpush1.bf16.msra.mxu0 %v2296_v17  ;;  %1430 = vmatpush1.bf16.msra.mxu1 %v2299_v18  ;;  %v2393_v17 = vld [vmem:[#allocation5 + $0x44c] ss:$16 sps:$4 sm:$0xff]   ;;  %v2388_v18 = vld [vmem:[#allocation5 + $0x440] ss:$16 sps:$4 sm:$0xff]  }
  0x86   :  { %1308 = vmatprep.subr.bf16.mxu0 %v2304_v19  ;;  %1431 = vmatprep.subr.bf16.mxu1 %v2307_v20  ;;  %v2391_v19 = vld [vmem:[#allocation5 + $0x448] ss:$16 sps:$4 sm:$0xff]   ;;  %v2396_v20 = vld [vmem:[#allocation5 + $0x464] ss:$16 sps:$4 sm:$0xff]  }
  0x89   :  { %1309 = vmatpush1.bf16.msra.mxu0 %v2302_v21  ;;  %1432 = vmatpush1.bf16.msra.mxu1 %v2305_v22  ;;  %v2399_v21 = vld [vmem:[#allocation5 + $0x46c] ss:$16 sps:$4 sm:$0xff]   ;;  %v2394_v22 = vld [vmem:[#allocation5 + $0x460] ss:$16 sps:$4 sm:$0xff]  }
  0x8a   :  { %1310 = vmatprep.subr.bf16.mxu0 %v2310_v23  ;;  %1433 = vmatprep.subr.bf16.mxu1 %v2313_v24  ;;  %v2397_v23 = vld [vmem:[#allocation5 + $0x468] ss:$16 sps:$4 sm:$0xff]   ;;  %v2402_v24 = vld [vmem:[#allocation5 + $0x484] ss:$16 sps:$4 sm:$0xff]  }
  0x8d   :  { %1311 = vmatpush1.bf16.msra.mxu0 %v2308_v25  ;;  %1434 = vmatpush1.bf16.msra.mxu1 %v2311_v26  ;;  %v2405_v25 = vld [vmem:[#allocation5 + $0x48c] ss:$16 sps:$4 sm:$0xff]   ;;  %v2400_v26 = vld [vmem:[#allocation5 + $0x480] ss:$16 sps:$4 sm:$0xff]  }
  0x8e   :  { %1312 = vmatprep.subr.bf16.mxu0 %v2316_v27  ;;  %1435 = vmatprep.subr.bf16.mxu1 %v2319_v28  ;;  %v2403_v27 = vld [vmem:[#allocation5 + $0x488] ss:$16 sps:$4 sm:$0xff]   ;;  %v2408_v28 = vld [vmem:[#allocation5 + $0x4a4] ss:$16 sps:$4 sm:$0xff]  }
  0x91   :  { %1313 = vmatpush1.bf16.msra.mxu0 %v2314_v31  ;;  %1436 = vmatpush1.bf16.msra.mxu1 %v2317_v32  ;;  %v2409_v31 = vld [vmem:[#allocation5 + $0x4a8] ss:$16 sps:$4 sm:$0xff]   ;;  %v2414_v32 = vld [vmem:[#allocation5 + $0x4c4] ss:$16 sps:$4 sm:$0xff]  }
  0x92   :  { %1314 = vmatprep.subr.bf16.mxu0 %v2322_v33  ;;  %1437 = vmatprep.subr.bf16.mxu1 %v2325_v34  ;;  %v2417_v33 = vld [vmem:[#allocation5 + $0x4cc] ss:$16 sps:$4 sm:$0xff]   ;;  %v2412_v34 = vld [vmem:[#allocation5 + $0x4c0] ss:$16 sps:$4 sm:$0xff]  }
  0x95   :  { %1315 = vmatpush1.bf16.msra.mxu0 %v2320_v35  ;;  %1438 = vmatpush1.bf16.msra.mxu1 %v2323_v36  ;;  %v2415_v35 = vld [vmem:[#allocation5 + $0x4c8] ss:$16 sps:$4 sm:$0xff]   ;;  %v2420_v36 = vld [vmem:[#allocation5 + $0x4e4] ss:$16 sps:$4 sm:$0xff]  }
  0x96   :  { %1316 = vmatprep.subr.bf16.mxu0 %v2328_v37  ;;  %1439 = vmatprep.subr.bf16.mxu1 %v2331_v38  ;;  %v2423_v37 = vld [vmem:[#allocation5 + $0x4ec] ss:$16 sps:$4 sm:$0xff]   ;;  %v2418_v38 = vld [vmem:[#allocation5 + $0x4e0] ss:$16 sps:$4 sm:$0xff]  }
  0x99   :  { %1317 = vmatpush1.bf16.msra.mxu0 %v2326_v39  ;;  %1440 = vmatpush1.bf16.msra.mxu1 %v2329_v40  ;;  %v2421_v39 = vld [vmem:[#allocation5 + $0x4e8] ss:$16 sps:$4 sm:$0xff]   ;;  %v2426_v40 = vld [vmem:[#allocation5 + $0x504] ss:$16 sps:$4 sm:$0xff]  }
  0x9a   :  { %1318 = vmatprep.subr.bf16.mxu0 %v2334_v41  ;;  %1441 = vmatprep.subr.bf16.mxu1 %v2337_v42  ;;  %v2429_v41 = vld [vmem:[#allocation5 + $0x50c] ss:$16 sps:$4 sm:$0xff]   ;;  %v2424_v42 = vld [vmem:[#allocation5 + $0x500] ss:$16 sps:$4 sm:$0xff]  }
  0x9d   :  { %1319 = vmatpush1.bf16.msra.mxu0 %v2332_v43  ;;  %1442 = vmatpush1.bf16.msra.mxu1 %v2335_v44  ;;  %v2427_v43 = vld [vmem:[#allocation5 + $0x508] ss:$16 sps:$4 sm:$0xff]   ;;  %v2432_v44 = vld [vmem:[#allocation5 + $0x524] ss:$16 sps:$4 sm:$0xff]  }
  0x9e   :  { %1320 = vmatprep.subr.bf16.mxu0 %v2340_v45  ;;  %1443 = vmatprep.subr.bf16.mxu1 %v2343_v46  ;;  %v2435_v45 = vld [vmem:[#allocation5 + $0x52c] ss:$16 sps:$4 sm:$0xff]   ;;  %v2430_v46 = vld [vmem:[#allocation5 + $0x520] ss:$16 sps:$4 sm:$0xff]  }
  0xa1   :  { %1321 = vmatpush1.bf16.msra.mxu0 %v2338_v47  ;;  %1444 = vmatpush1.bf16.msra.mxu1 %v2341_v48  ;;  %v2433_v47 = vld [vmem:[#allocation5 + $0x528] ss:$16 sps:$4 sm:$0xff]   ;;  %v2438_v48 = vld [vmem:[#allocation5 + $0x544] ss:$16 sps:$4 sm:$0xff]  }
  0xa2   :  { %1322 = vmatprep.subr.bf16.mxu0 %v2346_v49  ;;  %1445 = vmatprep.subr.bf16.mxu1 %v2349_v50  ;;  %v2441_v49 = vld [vmem:[#allocation5 + $0x54c] ss:$16 sps:$4 sm:$0xff]   ;;  %v2436_v50 = vld [vmem:[#allocation5 + $0x540] ss:$16 sps:$4 sm:$0xff]  }
  0xa5   :  { %1323 = vmatpush1.bf16.msra.mxu0 %v2344_v51  ;;  %1446 = vmatpush1.bf16.msra.mxu1 %v2347_v52  ;;  %v2439_v51 = vld [vmem:[#allocation5 + $0x548] ss:$16 sps:$4 sm:$0xff]   ;;  %v2444_v52 = vld [vmem:[#allocation5 + $0x564] ss:$16 sps:$4 sm:$0xff]  }
  0xa6   :  { %1324 = vmatprep.subr.bf16.mxu0 %v2352_v53  ;;  %1447 = vmatprep.subr.bf16.mxu1 %v2355_v54  ;;  %v2447_v53 = vld [vmem:[#allocation5 + $0x56c] ss:$16 sps:$4 sm:$0xff]   ;;  %v2442_v54 = vld [vmem:[#allocation5 + $0x560] ss:$16 sps:$4 sm:$0xff]  }
  0xa9   :  { %1325 = vmatpush1.bf16.msra.mxu0 %v2350_v55  ;;  %1448 = vmatpush1.bf16.msra.mxu1 %v2353_v56  ;;  %v2445_v55 = vld [vmem:[#allocation5 + $0x568] ss:$16 sps:$4 sm:$0xff]   ;;  %v2450_v56 = vld [vmem:[#allocation5 + $0x584] ss:$16 sps:$4 sm:$0xff]  }
  0xaa   :  { %1326 = vmatprep.subr.bf16.mxu0 %v2358_v57  ;;  %1449 = vmatprep.subr.bf16.mxu1 %v2361_v58  ;;  %v2453_v57 = vld [vmem:[#allocation5 + $0x58c] ss:$16 sps:$4 sm:$0xff]   ;;  %v2448_v58 = vld [vmem:[#allocation5 + $0x580] ss:$16 sps:$4 sm:$0xff]  }
  0xad   :  { %1327 = vmatpush1.bf16.msra.mxu0 %v2356_v59  ;;  %1450 = vmatpush1.bf16.msra.mxu1 %v2359_v60  ;;  %v2451_v59 = vld [vmem:[#allocation5 + $0x588] ss:$16 sps:$4 sm:$0xff]   ;;  %v2456_v60 = vld [vmem:[#allocation5 + $0x5a4] ss:$16 sps:$4 sm:$0xff]  }
  0xae   :  { %1328 = vmatprep.subr.bf16.mxu0 %v2364_v61  ;;  %1451 = vmatprep.subr.bf16.mxu1 %v2367_v62  ;;  %v2459_v61 = vld [vmem:[#allocation5 + $0x5ac] ss:$16 sps:$4 sm:$0xff]   ;;  %v2454_v62 = vld [vmem:[#allocation5 + $0x5a0] ss:$16 sps:$4 sm:$0xff]  }
  0xb1   :  { %1329 = vmatpush1.bf16.msra.mxu0 %v2362_v63  ;;  %1452 = vmatpush1.bf16.msra.mxu1 %v2365_v0  ;;  %v2457_v63 = vld [vmem:[#allocation5 + $0x5a8] ss:$16 sps:$4 sm:$0xff]   ;;  %v2462_v0 = vld [vmem:[#allocation5 + $0x5c4] ss:$16 sps:$4 sm:$0xff]  }
  0xb2   :  { %1330 = vmatprep.subr.bf16.mxu0 %v2370_v1  ;;  %1453 = vmatprep.subr.bf16.mxu1 %v2373_v2  ;;  %v2465_v1 = vld [vmem:[#allocation5 + $0x5cc] ss:$16 sps:$4 sm:$0xff]   ;;  %v2460_v2 = vld [vmem:[#allocation5 + $0x5c0] ss:$16 sps:$4 sm:$0xff]  }
  0xb5   :  { %1331 = vmatpush1.bf16.msra.mxu0 %v2368_v3  ;;  %1454 = vmatpush1.bf16.msra.mxu1 %v2371_v4  ;;  %v2463_v3 = vld [vmem:[#allocation5 + $0x5c8] ss:$16 sps:$4 sm:$0xff]   ;;  %v2468_v4 = vld [vmem:[#allocation5 + $0x5e4] ss:$16 sps:$4 sm:$0xff]  }
  0xb6   :  { %1341 = vmatprep.subr.bf16.mxu0 %v2378_v5  ;;  %1464 = vmatprep.subr.bf16.mxu1 %v2381_v6  ;;  %v2471_v5 = vld [vmem:[#allocation5 + $0x5ec] ss:$16 sps:$4 sm:$0xff]   ;;  %v2466_v6 = vld [vmem:[#allocation5 + $0x5e0] ss:$16 sps:$4 sm:$0xff]  }
  0xb8   :  { %1333 = vmatmul.mubr.bf16.vlgmr.msra.gmra.mrb[0].mxu0 %v1879_v7  ;;  %1456 = vmatmul.mubr.bf16.vlgmr.msra.gmra.mrb[0].mxu1 %v1879_v7  ;;  %v2469_v7 = vld [vmem:[#allocation5 + $0x5e8] ss:$16 sps:$4 sm:$0xff]  }
  0xb9   :  { %1342 = vmatpush1.bf16.msra.mxu0 %v2376_v8  ;;  %1465 = vmatpush1.bf16.msra.mxu1 %v2379_v9  ;;  %v2474_v8 = vld [vmem:[#allocation7 + $0x40] sm:$0xff]  }
  0xba   :  { %1343 = vmatprep.subr.bf16.mxu0 %v2384_v10  ;;  %1466 = vmatprep.subr.bf16.mxu1 %v2387_v12  ;;  %v2475_v9 = vld [vmem:[#allocation7 + $0xc0] sm:$0xff]   ;;  %v1881_v10 = vcombine.low %v2680_v11, %v2680_v11  ;;  %v2484_v11 = vld [vmem:[#allocation7 + $0x10] sm:$0xff]  }
  0xbb   :  { %1373 = vmatprep.mubr.bf16.mxu0 %v1882_v14  ;;  %1496 = vmatprep.mubr.bf16.mxu1 %v1882_v14  ;;  %v2476_v12 = vld [vmem:[#allocation7] sm:$0xff]   ;;  %v2478_v14 = vld [vmem:[#allocation7 + $0x48] sm:$0xff]  }
  0xbd   :  { %1344 = vmatpush1.bf16.msra.mxu0 %v2382_v13  ;;  %1467 = vmatpush1.bf16.msra.mxu1 %v2385_v15  ;;  %v2477_v13 = vld [vmem:[#allocation7 + $0x80] sm:$0xff]   ;;  %v2479_v15 = vld [vmem:[#allocation7 + $0xc8] sm:$0xff]  }
  0xbe   :  { %1345 = vmatprep.subr.bf16.mxu0 %v2390_v16  ;;  %1468 = vmatprep.subr.bf16.mxu1 %v2393_v17  ;;  %v2480_v16 = vld [vmem:[#allocation7 + $0x8] sm:$0xff]  }
  0xbf   :  { %v2481_v17 = vld [vmem:[#allocation7 + $0x88] sm:$0xff]  }
  0xc1   :  { %1346 = vmatpush1.bf16.msra.mxu0 %v2388_v18  ;;  %1469 = vmatpush1.bf16.msra.mxu1 %v2391_v19  ;;  %v2482_v18 = vld [vmem:[#allocation7 + $0x50] sm:$0xff]  }
  0xc2   :  { %1347 = vmatprep.subr.bf16.mxu0 %v2396_v20  ;;  %1470 = vmatprep.subr.bf16.mxu1 %v2399_v21  ;;  %v2483_v19 = vld [vmem:[#allocation7 + $0xd0] sm:$0xff]   ;;  %v2486_v21 = vld [vmem:[#allocation7 + $0x58] sm:$0xff]  }
  0xc3   :  { %v2485_v20 = vld [vmem:[#allocation7 + $0x90] sm:$0xff]  }
  0xc5   :  { %1348 = vmatpush1.bf16.msra.mxu0 %v2394_v22  ;;  %1471 = vmatpush1.bf16.msra.mxu1 %v2397_v23  ;;  %v2487_v22 = vld [vmem:[#allocation7 + $0xd8] sm:$0xff]  }
  0xc6   :  { %1349 = vmatprep.subr.bf16.mxu0 %v2402_v24  ;;  %1472 = vmatprep.subr.bf16.mxu1 %v2405_v25  ;;  %v2488_v23 = vld [vmem:[#allocation7 + $0x18] sm:$0xff]   ;;  %v2490_v25 = vld [vmem:[#allocation7 + $0x60] sm:$0xff]  }
  0xc7   :  { %v2489_v24 = vld [vmem:[#allocation7 + $0x98] sm:$0xff]  }
  0xc9   :  { %1350 = vmatpush1.bf16.msra.mxu0 %v2400_v26  ;;  %1473 = vmatpush1.bf16.msra.mxu1 %v2403_v27  ;;  %v2491_v26 = vld [vmem:[#allocation7 + $0xe0] sm:$0xff]  }
  0xca   :  { %1351 = vmatprep.subr.bf16.mxu0 %v2408_v28  ;;  %1474 = vmatprep.subr.bf16.mxu1 %v2411_v29  ;;  %v2492_v27 = vld [vmem:[#allocation7 + $0x20] sm:$0xff]   ;;  %v2494_v29 = vld [vmem:[#allocation7 + $0x68] sm:$0xff]  }
  0xcb   :  { %v2493_v28 = vld [vmem:[#allocation7 + $0xa0] sm:$0xff]  }
  0xcd   :  { %1352 = vmatpush1.bf16.msra.mxu0 %v2406_v30  ;;  %1475 = vmatpush1.bf16.msra.mxu1 %v2409_v31  ;;  %v2495_v30 = vld [vmem:[#allocation7 + $0xe8] sm:$0xff]  }
  0xce   :  { %1353 = vmatprep.subr.bf16.mxu0 %v2414_v32  ;;  %1476 = vmatprep.subr.bf16.mxu1 %v2417_v33  ;;  %v2496_v31 = vld [vmem:[#allocation7 + $0x28] sm:$0xff]   ;;  %v2498_v33 = vld [vmem:[#allocation7 + $0x70] sm:$0xff]  }
  0xcf   :  { %v2497_v32 = vld [vmem:[#allocation7 + $0xa8] sm:$0xff]  }
  0xd1   :  { %1354 = vmatpush1.bf16.msra.mxu0 %v2412_v34  ;;  %1477 = vmatpush1.bf16.msra.mxu1 %v2415_v35  ;;  %v2499_v34 = vld [vmem:[#allocation7 + $0xf0] sm:$0xff]  }
  0xd2   :  { %1355 = vmatprep.subr.bf16.mxu0 %v2420_v36  ;;  %1478 = vmatprep.subr.bf16.mxu1 %v2423_v37  ;;  %v2500_v35 = vld [vmem:[#allocation7 + $0x30] sm:$0xff]   ;;  %v2502_v37 = vld [vmem:[#allocation7 + $0x78] sm:$0xff]  }
  0xd3   :  { %v2501_v36 = vld [vmem:[#allocation7 + $0xb0] sm:$0xff]  }
  0xd5   :  { %1356 = vmatpush1.bf16.msra.mxu0 %v2418_v38  ;;  %1479 = vmatpush1.bf16.msra.mxu1 %v2421_v39  ;;  %v2503_v38 = vld [vmem:[#allocation7 + $0xf8] sm:$0xff]  }
  0xd6   :  { %1357 = vmatprep.subr.bf16.mxu0 %v2426_v40  ;;  %1480 = vmatprep.subr.bf16.mxu1 %v2429_v41  ;;  %v2504_v39 = vld [vmem:[#allocation7 + $0x38] sm:$0xff]   ;;  %v258_v41 = vlaneseq }
  0xd7   :  { %v2505_v40 = vld [vmem:[#allocation7 + $0xb8] sm:$0xff]  }
  0xd9   :  { %1358 = vmatpush1.bf16.msra.mxu0 %v2424_v42  ;;  %1481 = vmatpush1.bf16.msra.mxu1 %v2427_v43  ;;  %v259_v42 = vshrl.u32 %v258_v41, 7 }
  0xda   :  { %1359 = vmatprep.subr.bf16.mxu0 %v2432_v44  ;;  %1482 = vmatprep.subr.bf16.mxu1 %v2435_v45  ;;  %v256_v45 = vld [vmem:[%s2706_s2] sm:$0xf] }
  0xdb   :  { %v260_v43 = vsub.s32 0, %v259_v42  ;;  %v268_v44 = vsub.s32 2, %v259_v42 }
  0xdd   :  { %1360 = vmatpush1.bf16.msra.mxu0 %v2430_v46  ;;  %1483 = vmatpush1.bf16.msra.mxu1 %v2433_v47  ;;  %v264_v46 = vsub.s32 1, %v259_v42  ;;  %v272_v47 = vsub.s32 3, %v259_v42 }
  0xde   :  { %1361 = vmatprep.subr.bf16.mxu0 %v2438_v48  ;;  %1484 = vmatprep.subr.bf16.mxu1 %v2441_v49  ;;  %v261_v48 = vrot.slane %v256_v45, %v260_v43  ;;  %v269_v49 = vrot.slane %v256_v45, %v268_v44 }
  0xe1   :  { %1362 = vmatpush1.bf16.msra.mxu0 %v2436_v50  ;;  %1485 = vmatpush1.bf16.msra.mxu1 %v2439_v51  ;;  %v265_v50 = vrot.slane %v256_v45, %v264_v46  ;;  %v273_v51 = vrot.slane %v256_v45, %v272_v47 }
  0xe2   :  { %1363 = vmatprep.subr.bf16.mxu0 %v2444_v52  ;;  %1486 = vmatprep.subr.bf16.mxu1 %v2447_v53 }
  0xe5   :  { %1364 = vmatpush1.bf16.msra.mxu0 %v2442_v54  ;;  %1487 = vmatpush1.bf16.msra.mxu1 %v2445_v55 }
  0xe6   :  { %1365 = vmatprep.subr.bf16.mxu0 %v2450_v56  ;;  %1488 = vmatprep.subr.bf16.mxu1 %v2453_v57 }
  0xe9   :  { %1366 = vmatpush1.bf16.msra.mxu0 %v2448_v58  ;;  %1489 = vmatpush1.bf16.msra.mxu1 %v2451_v59 }
  0xea   :  { %1367 = vmatprep.subr.bf16.mxu0 %v2456_v60  ;;  %1490 = vmatprep.subr.bf16.mxu1 %v2459_v61 }
  0xed   :  { %1368 = vmatpush1.bf16.msra.mxu0 %v2454_v62  ;;  %1491 = vmatpush1.bf16.msra.mxu1 %v2457_v63 }
  0xee   :  { %1369 = vmatprep.subr.bf16.mxu0 %v2462_v0  ;;  %1492 = vmatprep.subr.bf16.mxu1 %v2465_v1 }
  0xf1   :  { %1370 = vmatpush1.bf16.msra.mxu0 %v2460_v2  ;;  %1493 = vmatpush1.bf16.msra.mxu1 %v2463_v3 }
  0xf2   :  { %1371 = vmatprep.subr.bf16.mxu0 %v2468_v4  ;;  %1494 = vmatprep.subr.bf16.mxu1 %v2471_v5 }
  0xf5   :  { %1372 = vmatpush1.bf16.msra.mxu0 %v2466_v6  ;;  %1495 = vmatpush1.bf16.msra.mxu1 %v2469_v7 }
  0xf6   :  { %2108 = vmatprep.subr.bf16.mxu0 %v2474_v8  ;;  %2130 = vmatprep.subr.bf16.mxu1 %v2475_v9 }
  0xf8   :  { %1374 = vmatmul.mubr.bf16.vlgmr.msra.gmra.mrb[0].mxu0 %v1881_v10  ;;  %1497 = vmatmul.mubr.bf16.vlgmr.msra.gmra.mrb[0].mxu1 %v1881_v10 }
  0xf9   :  { %2109 = vmatpush3.bf16.msra.mxu0 %v2476_v12  ;;  %2131 = vmatpush3.bf16.msra.mxu1 %v2477_v13 }
  0xfa   :  { %2110 = vmatprep.subr.bf16.mxu0 %v2478_v14  ;;  %2132 = vmatprep.subr.bf16.mxu1 %v2479_v15  ;;  %v2075_v15 = vld [vmem:[%s2708_s4] ss:$0 sm:$0xff] }
  0xfd   :  { %2111 = vmatpush3.bf16.msra.mxu0 %v2480_v16  ;;  %2133 = vmatpush3.bf16.msra.mxu1 %v2481_v17 }
  0xfe   :  { %2112 = vmatprep.subr.bf16.mxu0 %v2482_v18  ;;  %2134 = vmatprep.subr.bf16.mxu1 %v2483_v19 }
 0x101   :  { %2113 = vmatpush3.bf16.msra.mxu0 %v2484_v11  ;;  %2135 = vmatpush3.bf16.msra.mxu1 %v2485_v20 }
 0x102   :  { %2114 = vmatprep.subr.bf16.mxu0 %v2486_v21  ;;  %2136 = vmatprep.subr.bf16.mxu1 %v2487_v22 }
 0x105   :  { %2115 = vmatpush3.bf16.msra.mxu0 %v2488_v23  ;;  %2137 = vmatpush3.bf16.msra.mxu1 %v2489_v24 }
 0x106   :  { %2116 = vmatprep.subr.bf16.mxu0 %v2490_v25  ;;  %2138 = vmatprep.subr.bf16.mxu1 %v2491_v26 }
 0x109   :  { %2117 = vmatpush3.bf16.msra.mxu0 %v2492_v27  ;;  %2139 = vmatpush3.bf16.msra.mxu1 %v2493_v28 }
 0x10a   :  { %2118 = vmatprep.subr.bf16.mxu0 %v2494_v29  ;;  %2140 = vmatprep.subr.bf16.mxu1 %v2495_v30 }
 0x10d   :  { %2119 = vmatpush3.bf16.msra.mxu0 %v2496_v31  ;;  %2141 = vmatpush3.bf16.msra.mxu1 %v2497_v32 }
 0x10e   :  { %2120 = vmatprep.subr.bf16.mxu0 %v2498_v33  ;;  %2142 = vmatprep.subr.bf16.mxu1 %v2499_v34 }
 0x111   :  { %2121 = vmatpush3.bf16.msra.mxu0 %v2500_v35  ;;  %2143 = vmatpush3.bf16.msra.mxu1 %v2501_v36 }
 0x112   :  { %2122 = vmatprep.subr.bf16.mxu0 %v2502_v37  ;;  %2144 = vmatprep.subr.bf16.mxu1 %v2503_v38 }
 0x115   :  { %2123 = vmatpush3.bf16.msra.mxu0 %v2504_v39  ;;  %2145 = vmatpush3.bf16.msra.mxu1 %v2505_v40 }
 0x1cb   :  { %v1375_v52 = vpop.f32.mrb[0].mxu0  ;;  %v1498_v53 = vpop.f32.mrb[0].mxu1 }
 0x1cc   :  { %v2152_v54 = vadd.f32 %v1375_v52, %v261_v48  ;;  %v2154_v55 = vadd.f32 %v1498_v53, %v269_v49  ;;  %v1377_v56 = vpop.f32.mrb[1].mxu0  ;;  %v1500_v57 = vpop.f32.mrb[1].mxu1 }
 0x1cd   :  { %v2153_v58 = vadd.f32 %v1377_v56, %v265_v50  ;;  %v2155_v59 = vadd.f32 %v1500_v57, %v273_v51  ;;  %v1379_v60 = vpop.f32.mrb[2].mxu0  ;;  %v1502_v61 = vpop.f32.mrb[2].mxu1 }
 0x1ce   :  { %v1505_v62 = vmul.f32 0.01, %v2152_v54  ;;  %v1507_v63 = vmul.f32 0.01, %v2154_v55  ;;  %v1380_v0 = vpop.f32.mrb[3].mxu0  ;;  %v1503_v1 = vpop.f32.mrb[3].mxu1 }
 0x1cf   :  { %v1506_v2 = vmul.f32 0.01, %v2153_v58  ;;  %v1508_v3 = vmul.f32 0.01, %v2155_v59 }
 0x1d0   :  { %v1509_v4 = vmax.f32 %v2152_v54, %v1505_v62  ;;  %v1511_v5 = vmax.f32 %v2154_v55, %v1507_v63 }
 0x1d1   :  { %v1510_v6 = vmax.f32 %v2153_v58, %v1506_v2  ;;  %v1512_v7 = vmax.f32 %v2155_v59, %v1508_v3 }
 0x1d2   :  { %v1513_v10 = vpack.c.bf16 %v1509_v4, %v1509_v4  ;;  %v1515_v12 = vpack.c.bf16 %v1511_v5, %v1511_v5 }
 0x1d3   :  { %v1514_v8 = vpack.c.bf16 %v1510_v6, %v1510_v6  ;;  %v1516_v9 = vpack.c.bf16 %v1512_v7, %v1512_v7 }
 0x1d5   :  { %1812 = vmatprep.mubr.bf16.mxu0 %v1514_v8  ;;  %1852 = vmatprep.mubr.bf16.mxu1 %v1516_v9 }
 0x1d6   :  { %1813 = vmatmul.mubr.bf16.vlgmr.msra.gmra.mrb[4].mxu0 %v1513_v10  ;;  %1853 = vmatmul.mubr.bf16.vlgmr.msra.gmra.mrb[4].mxu1 %v1515_v12 }
 0x2a9   :  { %v2124_v13 = vpop.f32.mrb[4].mxu0  ;;  %v2146_v14 = vpop.f32.mrb[4].mxu1 }
 0x2aa   :  { %v2125_v16 = vpop.f32.mrb[5].mxu0  ;;  %v2147_v17 = vpop.f32.mrb[5].mxu1 }
 0x2ab   :  { %v2126_v18 = vadd.f32 %v2125_v16, %v2124_v13  ;;  %v2148_v19 = vadd.f32 %v2147_v17, %v2146_v14  ;;  %v2127_v11 = vpop.f32.mrb[6].mxu0  ;;  %v2149_v20 = vpop.f32.mrb[6].mxu1 }
 0x2ac   :  { %v2128_v21 = vpop.f32.mrb[7].mxu0  ;;  %v2150_v22 = vpop.f32.mrb[7].mxu1 }
 0x2ad   :  { %v1815_v23 = vadd.f32 %v2126_v18, %v2075_v15 }
 0x2af   :  { %v1855_v24 = vadd.f32 %v2148_v19, %v1815_v23 }
 0x2b1   :  { %1860 = vst [vmem:[#allocation8] sm:$0xff] %v1855_v24 }
 0x2b2   :  { %2583 = shalt.err (!%p2580_p0)
}
 0x2b3   :  { %s2584_s12 = scalar_lea.hbm %s2709_s5, 128 }
 0x2b4   :  { %p2585_p1 = scmp.ne.s32.totalorder %s2709_s5, %s2584_s12  ;;  %p2588_p2 = scmp.lt.u32.totalorder %s2584_s12, %s2709_s5 }
 0x2b6   :  { %p2590_p3 = pnand %p2588_p2, %p2585_p1 }
 0x2b8   :  { %2593 = shalt.err (!%p2590_p3)
}
 0x2b9   :  { %1870 = dma.vmem_to_hbm [thread:$0]  %s1868_s9, 128, %s2709_s5, [#allocation4]  }
 0x2ba   :  { %2598 = dma.done.wait [#allocation4], 128  }
 0x2bb   :  { %2599 = vsyncadd [#allocation4], 4294967168 }
 0x2bc   :  { %1874 = vsyncpa [#allocation3], 1 }
 0x2bd   :  { %1875 = vsyncpa [#allocation6], 1 }
 0x2be   :  { %1876 = vsyncpa [#allocation4], 1 }

</bundles_post_ra>
